<compile_context>
chip_gen: v5e
topology: v5e:2x2
jax: 0.10.0
libtpu: 0.0.40
codegen_flags: <defaults>
</compile_context>

<pallas_src>
import functools
import math

import jax
import jax.numpy as jnp
from jax.experimental import pallas as pl
from jax.experimental.pallas import tpu as pltpu

_F = 128          # padded (lane-dense) feature width for every layer
_N_LAYERS = 6


def _round_up(v, m):
    return ((v + m - 1) // m) * m


def _brain_kernel(x_ref, w_ref, b_ref, out_ref, *, in_dim, n_chunks):
    """Fused 6-layer MLP on a (TB, in_dim) activation tile.

    x_ref  : (TB, in_dim)    f32 activations (unpadded features)
    w_ref  : (6, 128, 128)   bf16 packed, padded weights (in, out) layout
    b_ref  : (6, 1, 128)     f32 packed, padded biases
    out_ref: (TB, 128)       f32 sigmoid(relu(fc6(...)))
    """
    TB = out_ref.shape[0]
    chunk = TB // n_chunks

    # Load the activation tile in independent sub-chunks; cast to bf16 for MXU.
    acts = [x_ref[c * chunk:(c + 1) * chunk, :].astype(jnp.bfloat16)
            for c in range(n_chunks)]

    for layer in range(_N_LAYERS):                 # static unroll: 6 layers
        last = layer == _N_LAYERS - 1
        w = w_ref[layer]                           # (128, 128) bf16
        if layer == 0:
            w = w[:in_dim, :]                      # static, sublane-aligned slice
        b = b_ref[layer]                           # (1, 128) f32
        nxt = []
        for c in range(n_chunks):                  # interleave independent chains
            y = jnp.dot(acts[c], w, preferred_element_type=jnp.float32)
            y = jnp.maximum(y + b, 0.0)            # bias + ReLU in f32
            nxt.append(y if last else y.astype(jnp.bfloat16))
        acts = nxt

    # sigmoid(a) == 0.5 * tanh(0.5 * a) + 0.5  (single EUP op + one FMA)
    for c in range(n_chunks):
        out_ref[c * chunk:(c + 1) * chunk, :] = 0.5 * jnp.tanh(0.5 * acts[c]) + 0.5


def brain_forward(x, params, *, block_batch=1024):
    """x: (B, input_size) f32; params: list of (W (in,out), b (1,out) or (out,))."""
    B, in_dim = x.shape
    out_dim = params[-1][0].shape[1]
    assert in_dim <= _F and all(w.shape[1] <= _F for w, _ in params), \
        "brain_forward supports layer widths <= 128"

    in_dim_p = _round_up(in_dim, 8)                # sublane-aligned input width

    # ---- host-side packing: pad each layer to 128x128 / 1x128 and stack ----
    w_stack, b_stack = [], []
    for w, b in params:
        fi, fo = w.shape
        wp = jnp.zeros((_F, _F), jnp.bfloat16).at[:fi, :fo].set(
            w.astype(jnp.bfloat16))
        bp = jnp.zeros((1, _F), jnp.float32).at[:, :fo].set(
            jnp.reshape(b, (1, -1)).astype(jnp.float32))
        w_stack.append(wp)
        b_stack.append(bp)
    w_packed = jnp.stack(w_stack)                  # (6, 128, 128) bf16 (~192 KiB)
    b_packed = jnp.stack(b_stack)                  # (6, 1, 128)   f32

    # ---- batch tiling ----
    if B >= block_batch:
        TB = block_batch
    elif B >= 16:
        # at least 2 grid steps so v7x's second TensorCore gets a share
        TB = _round_up(-(-B // 2), 8)
    else:
        TB = _round_up(max(B, 1), 8)               # respect (8,128) sublane tiling
    Bp = _round_up(B, TB)

    if (Bp, in_dim_p) != (B, in_dim):
        x_in = jnp.zeros((Bp, in_dim_p), jnp.float32).at[:B, :in_dim].set(
            x.astype(jnp.float32))
    else:
        x_in = x.astype(jnp.float32)

    # interleave two independent sub-chunks per grid step when the tile allows
    n_chunks = 2 if (TB >= 64 and TB % 16 == 0) else 1

    grid = (Bp // TB,)

    # Advisory cost: reflect the padded MXU work actually performed.
    flops = 2 * Bp * _F * (in_dim_p + (_N_LAYERS - 1) * _F)
    bytes_accessed = (x_in.size * 4 + Bp * _F * 4
                      + w_packed.size * 2 + b_packed.size * 4)
    cost = pl.CostEstimate(flops=flops, transcendentals=Bp * _F,
                           bytes_accessed=bytes_accessed)

    kernel = functools.partial(_brain_kernel, in_dim=in_dim_p, n_chunks=n_chunks)

    out_padded = pl.pallas_call(
        kernel,
        out_shape=jax.ShapeDtypeStruct((Bp, _F), jnp.float32),
        grid=grid,
        in_specs=[
            pl.BlockSpec((TB, in_dim_p), lambda i: (i, 0)),            # activations
            pl.BlockSpec((_N_LAYERS, _F, _F), lambda i: (0, 0, 0)),    # weights (VMEM-resident)
            pl.BlockSpec((_N_LAYERS, 1, _F), lambda i: (0, 0, 0)),     # biases  (VMEM-resident)
        ],
        out_specs=pl.BlockSpec((TB, _F), lambda i: (i, 0)),
        compiler_params=pltpu.CompilerParams(
            dimension_semantics=("parallel",)),
        cost_estimate=cost,
    )(x_in, w_packed, b_packed)

    return out_padded[:B, :out_dim]


def brain_reference(x, params, matmul_dtype=jnp.float32):
    """Pure-JAX reference matching the PyTorch forward (relu x6, then sigmoid).

    matmul_dtype=jnp.bfloat16 emulates the kernel's bf16-input / f32-accum MXU path.
    """
    a = x.astype(jnp.float32)
    for w, b in params:
        y = jnp.dot(a.astype(matmul_dtype), w.astype(matmul_dtype),
                    preferred_element_type=jnp.float32)
        a = jnp.maximum(y + jnp.reshape(b, (1, -1)).astype(jnp.float32), 0.0)
    return jax.nn.sigmoid(a)


def init_brain_params(key, input_size, output_size):
    """Deterministic PyTorch-style init: U(-1/sqrt(fan_in), 1/sqrt(fan_in))."""
    dims = [
        (input_size, input_size * 3),
        (input_size * 3, input_size * 2),
        (input_size * 2, input_size),
        (input_size, round(output_size * 0.5)),
        (round(output_size * 0.5), round(output_size * 0.75)),
        (round(output_size * 0.75), output_size),
    ]
    params = []
    for (fan_in, fan_out) in dims:
        key, kw, kb = jax.random.split(key, 3)
        bound = 1.0 / math.sqrt(fan_in)
        w = jax.random.uniform(kw, (fan_in, fan_out), jnp.float32, -bound, bound)
        b = jax.random.uniform(kb, (1, fan_out), jnp.float32, -bound, bound)
        params.append((w, b))
    return params


if __name__ == "__main__":
    input_size = 32
    output_size = 16
    batch = 8

    key = jax.random.PRNGKey(0)
    key, kx = jax.random.split(key)
    x = jax.random.normal(kx, (batch, input_size), dtype=jnp.float32)

    params = init_brain_params(key, input_size, output_size)

    fwd = jax.jit(brain_forward)
    out = jax.block_until_ready(fwd(x, params))

    assert out.shape == (batch, output_size)
    assert bool(jnp.all(jnp.isfinite(out)))
    # sigmoid(relu(.)) is always in [0.5, 1.0)
    assert bool(jnp.all(out >= 0.5)) and bool(jnp.all(out < 1.0))

    # numerical checks:
    #  - tight vs a reference that emulates the bf16-input / f32-accum matmuls
    #  - looser vs the pure-f32 reference (bf16 rounding compounds over 6 layers)
    ref_bf16 = brain_reference(x, params, matmul_dtype=jnp.bfloat16)
    ref_f32 = brain_reference(x, params, matmul_dtype=jnp.float32)
    assert bool(jnp.allclose(out, ref_bf16, rtol=5e-3, atol=5e-3)), \
        "mismatch vs bf16-emulated reference"
    assert bool(jnp.allclose(out, ref_f32, rtol=2e-2, atol=2e-2)), \
        "mismatch vs f32 reference"

    print("KERNEL_OK")
</pallas_src>

<mosaic_0001>
module attributes {stable_mosaic.version = 11 : i64} {
  func.func @_brain_kernel(%arg0: i32, %arg1: memref<8x32xf32, #tpu.memory_space<vmem>>, %arg2: memref<6x128x128xbf16, #tpu.memory_space<vmem>>, %arg3: memref<6x1x128xf32, #tpu.memory_space<vmem>>, %arg4: memref<8x128xf32, #tpu.memory_space<vmem>>) attributes {dimension_semantics = [#tpu.dimension_semantics<parallel>], iteration_bounds = array<i64: 1>, scalar_prefetch = 0 : i64, scratch_operands = 0 : i64, tpu.core_type = #tpu.core_type<tc>, window_params = [{transform_indices = @transform_0, window_bounds = array<i64: 8, 32>}, {pipeline_mode = #tpu.pipeline_mode<synchronous>, transform_indices = @transform_1, window_bounds = array<i64: 6, 128, 128>}, {pipeline_mode = #tpu.pipeline_mode<synchronous>, transform_indices = @transform_2, window_bounds = array<i64: 6, 1, 128>}, {transform_indices = @transform_3, window_bounds = array<i64: 8, 128>}]} {
    %c0 = arith.constant 0 : index
    %c0_0 = arith.constant 0 : index
    %0 = vector.load %arg1[%c0, %c0_0] : memref<8x32xf32, #tpu.memory_space<vmem>>, vector<8x32xf32>
    %1 = arith.truncf %0 : vector<8x32xf32> to vector<8x32xbf16>
    %c0_1 = arith.constant 0 : index
    %c0_2 = arith.constant 0 : index
    %c0_3 = arith.constant 0 : index
    %2 = vector.load %arg2[%c0_1, %c0_2, %c0_3] : memref<6x128x128xbf16, #tpu.memory_space<vmem>>, vector<1x128x128xbf16>
    %3 = vector.shape_cast %2 : vector<1x128x128xbf16> to vector<128x128xbf16>
    %4 = vector.extract_strided_slice %3 {offsets = [0, 0], sizes = [32, 128], strides = [1, 1]} : vector<128x128xbf16> to vector<32x128xbf16>
    %c0_4 = arith.constant 0 : index
    %c0_5 = arith.constant 0 : index
    %c0_6 = arith.constant 0 : index
    %5 = vector.load %arg3[%c0_4, %c0_5, %c0_6] : memref<6x1x128xf32, #tpu.memory_space<vmem>>, vector<1x1x128xf32>
    %6 = vector.shape_cast %5 : vector<1x1x128xf32> to vector<1x128xf32>
    %cst = arith.constant dense<0.000000e+00> : vector<8x128xf32>
    %7 = tpu.matmul %1, %4, %cst {dimension_numbers = #tpu.dot_dimension_numbers<[1], [0], [0], [1], [0, 0, 1, 1], [], []>} : vector<8x32xbf16>, vector<32x128xbf16>, vector<8x128xf32> -> vector<8x128xf32>
    %8 = vector.broadcast %6 : vector<1x128xf32> to vector<8x128xf32>
    %9 = arith.addf %7, %8 : vector<8x128xf32>
    %cst_7 = arith.constant 0.000000e+00 : f32
    %10 = vector.broadcast %cst_7 : f32 to vector<8x128xf32>
    %11 = arith.maximumf %9, %10 : vector<8x128xf32>
    %12 = arith.truncf %11 : vector<8x128xf32> to vector<8x128xbf16>
    %c1 = arith.constant 1 : index
    %c0_8 = arith.constant 0 : index
    %c0_9 = arith.constant 0 : index
    %13 = vector.load %arg2[%c1, %c0_8, %c0_9] : memref<6x128x128xbf16, #tpu.memory_space<vmem>>, vector<1x128x128xbf16>
    %14 = vector.shape_cast %13 : vector<1x128x128xbf16> to vector<128x128xbf16>
    %c1_10 = arith.constant 1 : index
    %c0_11 = arith.constant 0 : index
    %c0_12 = arith.constant 0 : index
    %15 = vector.load %arg3[%c1_10, %c0_11, %c0_12] : memref<6x1x128xf32, #tpu.memory_space<vmem>>, vector<1x1x128xf32>
    %16 = vector.shape_cast %15 : vector<1x1x128xf32> to vector<1x128xf32>
    %cst_13 = arith.constant dense<0.000000e+00> : vector<8x128xf32>
    %17 = tpu.matmul %12, %14, %cst_13 {dimension_numbers = #tpu.dot_dimension_numbers<[1], [0], [0], [1], [0, 0, 1, 1], [], []>} : vector<8x128xbf16>, vector<128x128xbf16>, vector<8x128xf32> -> vector<8x128xf32>
    %18 = vector.broadcast %16 : vector<1x128xf32> to vector<8x128xf32>
    %19 = arith.addf %17, %18 : vector<8x128xf32>
    %cst_14 = arith.constant 0.000000e+00 : f32
    %20 = vector.broadcast %cst_14 : f32 to vector<8x128xf32>
    %21 = arith.maximumf %19, %20 : vector<8x128xf32>
    %22 = arith.truncf %21 : vector<8x128xf32> to vector<8x128xbf16>
    %c2 = arith.constant 2 : index
    %c0_15 = arith.constant 0 : index
    %c0_16 = arith.constant 0 : index
    %23 = vector.load %arg2[%c2, %c0_15, %c0_16] : memref<6x128x128xbf16, #tpu.memory_space<vmem>>, vector<1x128x128xbf16>
    %24 = vector.shape_cast %23 : vector<1x128x128xbf16> to vector<128x128xbf16>
    %c2_17 = arith.constant 2 : index
    %c0_18 = arith.constant 0 : index
    %c0_19 = arith.constant 0 : index
    %25 = vector.load %arg3[%c2_17, %c0_18, %c0_19] : memref<6x1x128xf32, #tpu.memory_space<vmem>>, vector<1x1x128xf32>
    %26 = vector.shape_cast %25 : vector<1x1x128xf32> to vector<1x128xf32>
    %cst_20 = arith.constant dense<0.000000e+00> : vector<8x128xf32>
    %27 = tpu.matmul %22, %24, %cst_20 {dimension_numbers = #tpu.dot_dimension_numbers<[1], [0], [0], [1], [0, 0, 1, 1], [], []>} : vector<8x128xbf16>, vector<128x128xbf16>, vector<8x128xf32> -> vector<8x128xf32>
    %28 = vector.broadcast %26 : vector<1x128xf32> to vector<8x128xf32>
    %29 = arith.addf %27, %28 : vector<8x128xf32>
    %cst_21 = arith.constant 0.000000e+00 : f32
    %30 = vector.broadcast %cst_21 : f32 to vector<8x128xf32>
    %31 = arith.maximumf %29, %30 : vector<8x128xf32>
    %32 = arith.truncf %31 : vector<8x128xf32> to vector<8x128xbf16>
    %c3 = arith.constant 3 : index
    %c0_22 = arith.constant 0 : index
    %c0_23 = arith.constant 0 : index
    %33 = vector.load %arg2[%c3, %c0_22, %c0_23] : memref<6x128x128xbf16, #tpu.memory_space<vmem>>, vector<1x128x128xbf16>
    %34 = vector.shape_cast %33 : vector<1x128x128xbf16> to vector<128x128xbf16>
    %c3_24 = arith.constant 3 : index
    %c0_25 = arith.constant 0 : index
    %c0_26 = arith.constant 0 : index
    %35 = vector.load %arg3[%c3_24, %c0_25, %c0_26] : memref<6x1x128xf32, #tpu.memory_space<vmem>>, vector<1x1x128xf32>
    %36 = vector.shape_cast %35 : vector<1x1x128xf32> to vector<1x128xf32>
    %cst_27 = arith.constant dense<0.000000e+00> : vector<8x128xf32>
    %37 = tpu.matmul %32, %34, %cst_27 {dimension_numbers = #tpu.dot_dimension_numbers<[1], [0], [0], [1], [0, 0, 1, 1], [], []>} : vector<8x128xbf16>, vector<128x128xbf16>, vector<8x128xf32> -> vector<8x128xf32>
    %38 = vector.broadcast %36 : vector<1x128xf32> to vector<8x128xf32>
    %39 = arith.addf %37, %38 : vector<8x128xf32>
    %cst_28 = arith.constant 0.000000e+00 : f32
    %40 = vector.broadcast %cst_28 : f32 to vector<8x128xf32>
    %41 = arith.maximumf %39, %40 : vector<8x128xf32>
    %42 = arith.truncf %41 : vector<8x128xf32> to vector<8x128xbf16>
    %c4 = arith.constant 4 : index
    %c0_29 = arith.constant 0 : index
    %c0_30 = arith.constant 0 : index
    %43 = vector.load %arg2[%c4, %c0_29, %c0_30] : memref<6x128x128xbf16, #tpu.memory_space<vmem>>, vector<1x128x128xbf16>
    %44 = vector.shape_cast %43 : vector<1x128x128xbf16> to vector<128x128xbf16>
    %c4_31 = arith.constant 4 : index
    %c0_32 = arith.constant 0 : index
    %c0_33 = arith.constant 0 : index
    %45 = vector.load %arg3[%c4_31, %c0_32, %c0_33] : memref<6x1x128xf32, #tpu.memory_space<vmem>>, vector<1x1x128xf32>
    %46 = vector.shape_cast %45 : vector<1x1x128xf32> to vector<1x128xf32>
    %cst_34 = arith.constant dense<0.000000e+00> : vector<8x128xf32>
    %47 = tpu.matmul %42, %44, %cst_34 {dimension_numbers = #tpu.dot_dimension_numbers<[1], [0], [0], [1], [0, 0, 1, 1], [], []>} : vector<8x128xbf16>, vector<128x128xbf16>, vector<8x128xf32> -> vector<8x128xf32>
    %48 = vector.broadcast %46 : vector<1x128xf32> to vector<8x128xf32>
    %49 = arith.addf %47, %48 : vector<8x128xf32>
    %cst_35 = arith.constant 0.000000e+00 : f32
    %50 = vector.broadcast %cst_35 : f32 to vector<8x128xf32>
    %51 = arith.maximumf %49, %50 : vector<8x128xf32>
    %52 = arith.truncf %51 : vector<8x128xf32> to vector<8x128xbf16>
    %c5 = arith.constant 5 : index
    %c0_36 = arith.constant 0 : index
    %c0_37 = arith.constant 0 : index
    %53 = vector.load %arg2[%c5, %c0_36, %c0_37] : memref<6x128x128xbf16, #tpu.memory_space<vmem>>, vector<1x128x128xbf16>
    %54 = vector.shape_cast %53 : vector<1x128x128xbf16> to vector<128x128xbf16>
    %c5_38 = arith.constant 5 : index
    %c0_39 = arith.constant 0 : index
    %c0_40 = arith.constant 0 : index
    %55 = vector.load %arg3[%c5_38, %c0_39, %c0_40] : memref<6x1x128xf32, #tpu.memory_space<vmem>>, vector<1x1x128xf32>
    %56 = vector.shape_cast %55 : vector<1x1x128xf32> to vector<1x128xf32>
    %cst_41 = arith.constant dense<0.000000e+00> : vector<8x128xf32>
    %57 = tpu.matmul %52, %54, %cst_41 {dimension_numbers = #tpu.dot_dimension_numbers<[1], [0], [0], [1], [0, 0, 1, 1], [], []>} : vector<8x128xbf16>, vector<128x128xbf16>, vector<8x128xf32> -> vector<8x128xf32>
    %58 = vector.broadcast %56 : vector<1x128xf32> to vector<8x128xf32>
    %59 = arith.addf %57, %58 : vector<8x128xf32>
    %cst_42 = arith.constant 0.000000e+00 : f32
    %60 = vector.broadcast %cst_42 : f32 to vector<8x128xf32>
    %61 = arith.maximumf %59, %60 : vector<8x128xf32>
    %cst_43 = arith.constant 5.000000e-01 : f32
    %62 = vector.broadcast %cst_43 : f32 to vector<8x128xf32>
    %63 = arith.mulf %62, %61 : vector<8x128xf32>
    %64 = math.tanh %63 : vector<8x128xf32>
    %cst_44 = arith.constant 5.000000e-01 : f32
    %65 = vector.broadcast %cst_44 : f32 to vector<8x128xf32>
    %66 = arith.mulf %65, %64 : vector<8x128xf32>
    %cst_45 = arith.constant 5.000000e-01 : f32
    %67 = vector.broadcast %cst_45 : f32 to vector<8x128xf32>
    %68 = arith.addf %66, %67 : vector<8x128xf32>
    %c0_46 = arith.constant 0 : index
    %c0_47 = arith.constant 0 : index
    %69 = vector.load %arg4[%c0_46, %c0_47] : memref<8x128xf32, #tpu.memory_space<vmem>>, vector<8x128xf32>
    tpu.vector_store %arg4[%c0_46, %c0_47], %68 {strides = array<i32>} : memref<8x128xf32, #tpu.memory_space<vmem>>, vector<8x128xf32>,
    return
  }
  func.func @transform_0(%arg0: i32) -> (i32, i32) {
    %c0_i32 = arith.constant 0 : i32
    %c0_i32_0 = arith.constant 0 : i32
    return %arg0, %c0_i32 : i32, i32
  }
  func.func @transform_1(%arg0: i32) -> (i32, i32, i32) {
    %c0_i32 = arith.constant 0 : i32
    %c0_i32_0 = arith.constant 0 : i32
    %c0_i32_1 = arith.constant 0 : i32
    %c0_i32_2 = arith.constant 0 : i32
    return %c0_i32, %c0_i32_0, %c0_i32_1 : i32, i32, i32
  }
  func.func @transform_2(%arg0: i32) -> (i32, i32, i32) {
    %c0_i32 = arith.constant 0 : i32
    %c0_i32_0 = arith.constant 0 : i32
    %c0_i32_1 = arith.constant 0 : i32
    %c0_i32_2 = arith.constant 0 : i32
    return %c0_i32, %c0_i32_0, %c0_i32_1 : i32, i32, i32
  }
  func.func @transform_3(%arg0: i32) -> (i32, i32) {
    %c0_i32 = arith.constant 0 : i32
    %c0_i32_0 = arith.constant 0 : i32
    return %arg0, %c0_i32 : i32, i32
  }
}

</mosaic_0001>

<bundles_post_ra>
// kernel: brain_forward.1
= control target key start
LH: loop header
LB: loop body
LE: loop exit
PB: predicated region body
PF: predicated region fallthrough
CT: control target
= control target key end

     0   :  { %s1004_s0 = inlined_call_operand.vmem [shape: f32[8,32], index: 0, kind: input, shape index: {}]   ;;  %s1005_s1 = inlined_call_operand.vmem [shape: bf16[6,128,128], index: 1, kind: input, shape index: {}]   ;;  %s1006_s2 = inlined_call_operand.vmem [shape: f32[6,1,128], index: 2, kind: input, shape index: {}]   ;;  %s1007_s3 = inlined_call_operand.hbm [shape: f32[8,128], index: 3, kind: output, shape index: {}]  }
   0x1   :  { %v757_v0 = vld [vmem:[%s1005_s1 + $0x8] sm:$0xff]  ;;  %v765_v1 = vld [vmem:[%s1005_s1 + $0x78] sm:$0xff]  ;;  %v756_v2 = vld [vmem:[%s1005_s1] sm:$0xff] }
   0x2   :  { %48 = vmatpush.bf16.msra.mxu0 %v757_v0  ;;  %v16_v3 = vld [vmem:[%s1004_s0] sm:$0xff]  ;;  %127 = vmatpush.bf16.msra.mxu1 %v765_v1  ;;  %v764_v4 = vld [vmem:[%s1005_s1 + $0x70] sm:$0xff] }
   0x3   :  { %v17_v5 = vpack.c.bf16 %v16_v3, %v16_v3 }
   0x4   :  { %8 = vsyncpa [#allocation3], 0  ;;  %vm38_vm0 = vcmask 261120   ;;  %v763_v6 = vld [vmem:[%s1005_s1 + $0x68] sm:$0xff]  ;;  %v762_v7 = vld [vmem:[%s1005_s1 + $0x60] sm:$0xff]  ;;  %s493_s28 = sshll.u32 %s1007_s3, 4  ;;  %s494_s28 = int_to_ptr.hbm [resolvable:$true] %s493_s28 }
   0x5   :  { %v761_v8 = vld [vmem:[%s1005_s1 + $0x58] sm:$0xff]  ;;  %v760_v9 = vld [vmem:[%s1005_s1 + $0x50] sm:$0xff]  ;;  %v759_v10 = vld [vmem:[%s1005_s1 + $0x48] sm:$0xff] }
   0x6   :  { %49 = vmatpush.bf16.msra.mxu0 %v756_v2  ;;  %128 = vmatpush.bf16.msra.mxu1 %v764_v4  ;;  %v758_v11 = vld [vmem:[%s1005_s1 + $0x40] sm:$0xff]  ;;  %v773_v12 = vld [vmem:[%s1005_s1 + $0xb8] sm:$0xff]  ;;  %v772_v13 = vld [vmem:[%s1005_s1 + $0xb0] sm:$0xff] }
   0x7   :  { %212 = vmatpush.bf16.msra.mxu2 %v773_v12  ;;  %v771_v14 = vld [vmem:[%s1005_s1 + $0xa8] sm:$0xff]  ;;  %v770_v15 = vld [vmem:[%s1005_s1 + $0xa0] sm:$0xff]  ;;  %v769_v16 = vld [vmem:[%s1005_s1 + $0x98] sm:$0xff] }
   0x8   :  { %v768_v17 = vld [vmem:[%s1005_s1 + $0x90] sm:$0xff]  ;;  %v799_v18 = vld [vmem:[%s1006_s2] ss:$0 sm:$0xff]  ;;  %v767_v24 = vld [vmem:[%s1005_s1 + $0x88] sm:$0xff] }
   0x9   :  { %510 = vmatmul.msk.bf16.vlgmr.msra.gmra.mxu0 %vm38_vm0, %v17_v5  ;;  %v766_v25 = vld [vmem:[%s1005_s1 + $0x80] sm:$0xff]  ;;  %v781_v26 = vld [vmem:[%s1005_s1 + $0xf8] sm:$0xff]  ;;  %v780_v27 = vld [vmem:[%s1005_s1 + $0xf0] sm:$0xff] }
   0xa   :  { %129 = vmatpush.bf16.msra.mxu1 %v763_v6  ;;  %297 = vmatpush.bf16.msra.mxu3 %v781_v26  ;;  %v779_v28 = vld [vmem:[%s1005_s1 + $0xe8] sm:$0xff]  ;;  %v778_v29 = vld [vmem:[%s1005_s1 + $0xe0] sm:$0xff]  ;;  %v777_v30 = vld [vmem:[%s1005_s1 + $0xd8] sm:$0xff] }
   0xb   :  { %213 = vmatpush.bf16.msra.mxu2 %v772_v13  ;;  %v776_v31 = vld [vmem:[%s1005_s1 + $0xd0] sm:$0xff]  ;;  %v800_v32 = vld [vmem:[%s1006_s2 + $0x1] ss:$0 sm:$0xff]  ;;  %v775_v38 = vld [vmem:[%s1005_s1 + $0xc8] sm:$0xff] }
   0xc   :  { %v774_v39 = vld [vmem:[%s1005_s1 + $0xc0] sm:$0xff]  ;;  %v789_v40 = vld [vmem:[%s1005_s1 + $0x138] sm:$0xff]  ;;  %v788_v41 = vld [vmem:[%s1005_s1 + $0x130] sm:$0xff] }
   0xd   :  { %382 = vmatpush.bf16.msrb.mxu0 %v789_v40  ;;  %v787_v42 = vld [vmem:[%s1005_s1 + $0x128] sm:$0xff]  ;;  %v786_v43 = vld [vmem:[%s1005_s1 + $0x120] sm:$0xff]  ;;  %v785_v44 = vld [vmem:[%s1005_s1 + $0x118] sm:$0xff] }
   0xe   :  { %130 = vmatpush.bf16.msra.mxu1 %v762_v7  ;;  %298 = vmatpush.bf16.msra.mxu3 %v780_v27  ;;  %v784_v45 = vld [vmem:[%s1005_s1 + $0x110] sm:$0xff]  ;;  %v801_v46 = vld [vmem:[%s1006_s2 + $0x2] ss:$0 sm:$0xff]  ;;  %v783_v52 = vld [vmem:[%s1005_s1 + $0x108] sm:$0xff] }
   0xf   :  { %214 = vmatpush.bf16.msra.mxu2 %v771_v14  ;;  %v782_v53 = vld [vmem:[%s1005_s1 + $0x100] sm:$0xff]  ;;  %v797_v54 = vld [vmem:[%s1005_s1 + $0x178] sm:$0xff]  ;;  %v796_v55 = vld [vmem:[%s1005_s1 + $0x170] sm:$0xff] }
  0x10   :  { %v795_v56 = vld [vmem:[%s1005_s1 + $0x168] sm:$0xff]  ;;  %v794_v57 = vld [vmem:[%s1005_s1 + $0x160] sm:$0xff]  ;;  %v793_v58 = vld [vmem:[%s1005_s1 + $0x158] sm:$0xff] }
  0x11   :  { %383 = vmatpush.bf16.msrb.mxu0 %v788_v41  ;;  %v792_v59 = vld [vmem:[%s1005_s1 + $0x150] sm:$0xff]  ;;  %v802_v60 = vld [vmem:[%s1006_s2 + $0x3] ss:$0 sm:$0xff]  ;;  %v791_v2 = vld [vmem:[%s1005_s1 + $0x148] sm:$0xff] }
  0x12   :  { %131 = vmatpush.bf16.msra.mxu1 %v761_v8  ;;  %299 = vmatpush.bf16.msra.mxu3 %v779_v28  ;;  %v790_v3 = vld [vmem:[%s1005_s1 + $0x140] sm:$0xff]  ;;  %s833_s1 = smov [#allocation2]  }
  0x13   :  { %215 = vmatpush.bf16.msra.mxu2 %v770_v15  ;;  %v803_v4 = vld [vmem:[%s1006_s2 + $0x4] ss:$0 sm:$0xff]  ;;  %s491_s0 = sshll.u32 %s833_s1, 4  ;;  %s492_s0 = int_to_ptr.vmem [resolvable:$true] %s491_s0 }
  0x15   :  { %384 = vmatpush.bf16.msrb.mxu0 %v787_v42 }
  0x16   :  { %132 = vmatpush.bf16.msra.mxu1 %v760_v9  ;;  %300 = vmatpush.bf16.msra.mxu3 %v778_v29 }
  0x17   :  { %216 = vmatpush.bf16.msra.mxu2 %v769_v16 }
  0x19   :  { %385 = vmatpush.bf16.msrb.mxu0 %v786_v43 }
  0x1a   :  { %133 = vmatpush.bf16.msra.mxu1 %v759_v10  ;;  %301 = vmatpush.bf16.msra.mxu3 %v777_v30  ;;  %v804_v10 = vld [vmem:[%s1006_s2 + $0x5] ss:$0 sm:$0xff] }
  0x1b   :  { %217 = vmatpush.bf16.msra.mxu2 %v768_v17 }
  0x1d   :  { %386 = vmatpush.bf16.msrb.mxu0 %v785_v44 }
  0x1e   :  { %134 = vmatpush.bf16.msra.mxu1 %v758_v11  ;;  %302 = vmatpush.bf16.msra.mxu3 %v776_v31 }
  0x1f   :  { %218 = vmatpush.bf16.msra.mxu2 %v767_v24 }
  0x21   :  { %387 = vmatpush.bf16.msrb.mxu0 %v784_v45 }
  0x22   :  { %303 = vmatpush.bf16.msra.mxu3 %v775_v38  ;;  %467 = vmatpush.bf16.msrb.mxu1 %v797_v54 }
  0x23   :  { %219 = vmatpush.bf16.msra.mxu2 %v766_v25 }
  0x25   :  { %388 = vmatpush.bf16.msrb.mxu0 %v783_v52 }
  0x26   :  { %304 = vmatpush.bf16.msra.mxu3 %v774_v39  ;;  %468 = vmatpush.bf16.msrb.mxu1 %v796_v55 }
  0x29   :  { %389 = vmatpush.bf16.msrb.mxu0 %v782_v53 }
  0x2a   :  { %469 = vmatpush.bf16.msrb.mxu1 %v795_v56 }
  0x2e   :  { %470 = vmatpush.bf16.msrb.mxu1 %v794_v57 }
  0x32   :  { %471 = vmatpush.bf16.msrb.mxu1 %v793_v58 }
  0x36   :  { %472 = vmatpush.bf16.msrb.mxu1 %v792_v59 }
  0x3a   :  { %473 = vmatpush.bf16.msrb.mxu1 %v791_v2 }
  0x3e   :  { %474 = vmatpush.bf16.msrb.mxu1 %v790_v3 }
  0x86   :  { %v51_v19 = vpop.f32.mrf.mxu0 }
  0x87   :  { %v52_v20 = vadd.f32 %v799_v18, %v51_v19 }
  0x89   :  { %v55_v21 = vmax.f32 %v52_v20, 0.0 }
  0x8b   :  { %v56_v22 = vpack.c.bf16 %v55_v21, %v55_v21 }
  0x8d   :  { %135 = vmatmul.bf16.vlgmr.msra.gmra.mxu1 %v56_v22 }
  0x8e   :  { %v53_v23 = vpop.f32.mrf.mxu0 }
 0x10a   :  { %v136_v33 = vpop.f32.mrf.mxu1 }
 0x10b   :  { %v137_v34 = vadd.f32 %v800_v32, %v136_v33 }
 0x10d   :  { %v140_v35 = vmax.f32 %v137_v34, 0.0 }
 0x10f   :  { %v141_v36 = vpack.c.bf16 %v140_v35, %v140_v35 }
 0x111   :  { %220 = vmatmul.bf16.vlgmr.msra.gmra.mxu2 %v141_v36 }
 0x112   :  { %v138_v37 = vpop.f32.mrf.mxu1 }
 0x194   :  { %v221_v47 = vpop.f32.mrf.mxu2 }
 0x195   :  { %v222_v48 = vadd.f32 %v801_v46, %v221_v47 }
 0x197   :  { %v225_v49 = vmax.f32 %v222_v48, 0.0 }
 0x199   :  { %v226_v50 = vpack.c.bf16 %v225_v49, %v225_v49 }
 0x19b   :  { %305 = vmatmul.bf16.vlgmr.msra.gmra.mxu3 %v226_v50 }
 0x19c   :  { %v223_v51 = vpop.f32.mrf.mxu2 }
 0x21e   :  { %v306_v61 = vpop.f32.mrf.mxu3 }
 0x21f   :  { %v307_v62 = vadd.f32 %v802_v60, %v306_v61 }
 0x221   :  { %v310_v63 = vmax.f32 %v307_v62, 0.0 }
 0x223   :  { %v311_v0 = vpack.c.bf16 %v310_v63, %v310_v63 }
 0x225   :  { %390 = vmatmul.bf16.vlgmr.msrb.gmra.mxu0 %v311_v0 }
 0x226   :  { %v308_v1 = vpop.f32.mrf.mxu3 }
 0x2a2   :  { %v391_v5 = vpop.f32.mrf.mxu0 }
 0x2a3   :  { %v392_v6 = vadd.f32 %v803_v4, %v391_v5 }
 0x2a5   :  { %v395_v7 = vmax.f32 %v392_v6, 0.0 }
 0x2a7   :  { %v396_v8 = vpack.c.bf16 %v395_v7, %v395_v7 }
 0x2a9   :  { %475 = vmatmul.bf16.vlgmr.msrb.gmra.mxu1 %v396_v8 }
 0x2aa   :  { %v393_v9 = vpop.f32.mrf.mxu0 }
 0x326   :  { %v476_v11 = vpop.f32.mrf.mxu1 }
 0x327   :  { %v477_v12 = vadd.f32 %v804_v10, %v476_v11 }
 0x329   :  { %v480_v13 = vmax.f32 %v477_v12, 0.0 }
 0x32b   :  { %v481_v14 = vmul.f32 0.5, %v480_v13 }
 0x32d   :  { %805 = vtanh.f32 %v481_v14 }
 0x32e   :  { %v478_v15 = vpop.f32.mrf.mxu1 }
 0x333   :  { %v806_v16 = vpop.eup %805 }
 0x334   :  { %v483_v17 = vmul.f32 0.5, %v806_v16 }
 0x336   :  { %v484_v18 = vadd.f32 0.5, %v483_v17 }
 0x338   :  { %485 = vst [vmem:[#allocation2] sm:$0xff] %v484_v18 }
 0x339   :  { %496 = dma.vmem_to_hbm [thread:$0]  %s492_s0, 128, %s494_s28, [#allocation3]  }
 0x33a   :  { %831 = dma.done.wait [#allocation3], 128  }
 0x33b   :  { %832 = vsyncadd [#allocation3], 4294967168 }
 0x33c   :  { %501 = vsyncpa [#allocation3], 1 }

</bundles_post_ra>
